<compile_context>
chip_gen: v7x
topology: tpu7x:2x2x1
jax: 0.10.0
libtpu: 0.0.40
codegen_flags: <defaults>
</compile_context>

<pallas_src>
import functools
import math

import jax
import jax.numpy as jnp
import numpy as np
from jax import lax
from jax.experimental import pallas as pl
from jax.experimental.pallas import tpu as pltpu

_NEG_LARGE = -1e30  # large finite negative instead of -inf (avoids inf-inf NaN)


def _mha_kernel(h_ref, bm_ref, wqkv_ref, bqkv_ref, wo_ref, bo_ref, out_ref,
                *, num_heads, dim_k):
    H = h_ref[...]                                              # (N, D)

    # One MXU call for every head's Q, K and V projection (scale pre-folded
    # into the Q columns on the host).
    qkv = jnp.dot(H, wqkv_ref[...],
                  preferred_element_type=jnp.float32) + bqkv_ref[...]

    bm = bm_ref[...]                                            # masked bias (N, N)

    head_outs = []
    for h in range(num_heads):                                  # unrolled at trace time
        q = qkv[:, h * dim_k:(h + 1) * dim_k]
        k = qkv[:, (num_heads + h) * dim_k:(num_heads + h + 1) * dim_k]
        v = qkv[:, (2 * num_heads + h) * dim_k:(2 * num_heads + h + 1) * dim_k]

        # q @ k^T without materializing a transpose: contract last axes.
        logits = lax.dot_general(q, k, (((1,), (1,)), ((), ())),
                                 preferred_element_type=jnp.float32) + bm

        m = jnp.max(logits, axis=-1, keepdims=True)
        p = jnp.exp(logits - m)
        w = p * pl.reciprocal(jnp.sum(p, axis=-1, keepdims=True), approx=True)

        head_outs.append(jnp.dot(w, v, preferred_element_type=jnp.float32))

    # Fused output projection: concat(head_outs) @ stacked wo, single matmul.
    concat = jnp.concatenate(head_outs, axis=-1)                # (N, num_heads*dim_k)
    out_ref[...] = jnp.dot(concat, wo_ref[...],
                           preferred_element_type=jnp.float32) + bo_ref[...]


def graphormer_mha(H, b_matrix, attention_mask, params):
    N, D = H.shape
    num_heads, _, dim_k = params["wq"].shape
    scale = 1.0 / math.sqrt(dim_k)

    # ---------------- host-side preprocessing (layout plumbing) ----------------
    # Fold the attention scale into the Q projection.
    wq = params["wq"] * scale                                   # (h, D, dk)
    bq = params["bq"] * scale                                   # (h, 1, dk)

    def stack_w(w):   # (h, D, dk) -> (D, h*dk), heads contiguous on the lane axis
        return jnp.transpose(w, (1, 0, 2)).reshape(D, num_heads * dim_k)

    def stack_b(b):   # (h, 1, dk) -> (1, h*dk)
        return b.reshape(1, num_heads * dim_k)

    wqkv = jnp.concatenate(
        [stack_w(wq), stack_w(params["wk"]), stack_w(params["wv"])], axis=-1)
    bqkv = jnp.concatenate(
        [stack_b(bq), stack_b(params["bk"]), stack_b(params["bv"])], axis=-1)
    wo = params["wo"].reshape(num_heads * dim_k, D)             # (h*dk, D)
    bo = params["bo"]                                           # (1, D)

    # Fold the mask into the bias: single (N, N) stream, no compare in kernel.
    b_masked = jnp.where(attention_mask, b_matrix, _NEG_LARGE).astype(jnp.float32)

    kernel = functools.partial(_mha_kernel, num_heads=num_heads, dim_k=dim_k)

    vmem = pl.BlockSpec(memory_space=pltpu.MemorySpace.VMEM)
    # TODO(synk): for production-sized N, switch to a flash-style tiling over
    # the key axis (online softmax) with a "parallel" row-block grid so the
    # (N,N) bias never has to be VMEM-resident and v7x's 2 TCs can be used.
    return pl.pallas_call(
        kernel,
        out_shape=jax.ShapeDtypeStruct((N, D), jnp.float32),
        in_specs=[vmem] * 6,
        out_specs=vmem,
    )(H, b_masked, wqkv, bqkv, wo, bo)


def ref_mha(H, b_matrix, attention_mask, params):
    """Pure-JAX reference mirroring the PyTorch module."""
    num_heads, _, dim_k = params["wq"].shape
    outs = []
    for h in range(num_heads):
        Q = H @ params["wq"][h] + params["bq"][h, 0]
        K = H @ params["wk"][h] + params["bk"][h, 0]
        V = H @ params["wv"][h] + params["bv"][h, 0]
        logits = jnp.where(attention_mask,
                           (Q @ K.T) / math.sqrt(dim_k) + b_matrix,
                           -jnp.inf)
        w = jax.nn.softmax(logits, axis=-1)
        outs.append(w @ V)
    # cat(outs, -1) @ W_out^T + b_out  ==  sum_h outs[h] @ wo[h] + bo
    y = sum(outs[h] @ params["wo"][h] for h in range(num_heads)) + params["bo"][0]
    return y


if __name__ == "__main__":
    N = 16            # number of graph nodes
    hidden_dim = 32
    num_heads = 4
    dim_k = hidden_dim // num_heads

    key = jax.random.PRNGKey(0)
    ks = jax.random.split(key, 12)

    H = jax.random.normal(ks[0], (N, hidden_dim), dtype=jnp.float32)
    b_matrix = 0.1 * jax.random.normal(ks[1], (N, N), dtype=jnp.float32)
    mask = jax.random.bernoulli(ks[2], 0.7, (N, N))
    mask = mask | jnp.eye(N, dtype=bool)   # keep at least one valid entry per row

    s = 0.1
    params = {
        "wq": s * jax.random.normal(ks[3], (num_heads, hidden_dim, dim_k), jnp.float32),
        "bq": s * jax.random.normal(ks[4], (num_heads, 1, dim_k), jnp.float32),
        "wk": s * jax.random.normal(ks[5], (num_heads, hidden_dim, dim_k), jnp.float32),
        "bk": s * jax.random.normal(ks[6], (num_heads, 1, dim_k), jnp.float32),
        "wv": s * jax.random.normal(ks[7], (num_heads, hidden_dim, dim_k), jnp.float32),
        "bv": s * jax.random.normal(ks[8], (num_heads, 1, dim_k), jnp.float32),
        "wo": s * jax.random.normal(ks[9], (num_heads, dim_k, hidden_dim), jnp.float32),
        "bo": s * jax.random.normal(ks[10], (1, hidden_dim), jnp.float32),
    }

    out = graphormer_mha(H, b_matrix, mask, params)
    out = jax.block_until_ready(out)

    expected = ref_mha(H, b_matrix, mask, params)
    # Tolerance accounts for pl.reciprocal(approx=True) (~2^-12 rel error).
    np.testing.assert_allclose(np.asarray(out), np.asarray(expected),
                               rtol=1e-3, atol=1e-3)
    print("KERNEL_OK")
</pallas_src>

<mosaic_0001>
module attributes {stable_mosaic.version = 11 : i64} {
  func.func @_mha_kernel(%arg0: memref<16x32xf32, #tpu.memory_space<vmem>>, %arg1: memref<16x16xf32, #tpu.memory_space<vmem>>, %arg2: memref<32x96xf32, #tpu.memory_space<vmem>>, %arg3: memref<1x96xf32, #tpu.memory_space<vmem>>, %arg4: memref<32x32xf32, #tpu.memory_space<vmem>>, %arg5: memref<1x32xf32, #tpu.memory_space<vmem>>, %arg6: memref<16x32xf32, #tpu.memory_space<vmem>>) attributes {dimension_semantics = [], scalar_prefetch = 0 : i64, scratch_operands = 0 : i64, tpu.core_type = #tpu.core_type<tc>} {
    %c0 = arith.constant 0 : index
    %c0_0 = arith.constant 0 : index
    %0 = vector.load %arg0[%c0, %c0_0] : memref<16x32xf32, #tpu.memory_space<vmem>>, vector<16x32xf32>
    %c0_1 = arith.constant 0 : index
    %c0_2 = arith.constant 0 : index
    %1 = vector.load %arg2[%c0_1, %c0_2] : memref<32x96xf32, #tpu.memory_space<vmem>>, vector<32x96xf32>
    %cst = arith.constant dense<0.000000e+00> : vector<16x96xf32>
    %2 = tpu.matmul %0, %1, %cst {dimension_numbers = #tpu.dot_dimension_numbers<[1], [0], [0], [1], [0, 0, 1, 1], [], []>} : vector<16x32xf32>, vector<32x96xf32>, vector<16x96xf32> -> vector<16x96xf32>
    %c0_3 = arith.constant 0 : index
    %c0_4 = arith.constant 0 : index
    %3 = vector.load %arg3[%c0_3, %c0_4] : memref<1x96xf32, #tpu.memory_space<vmem>>, vector<1x96xf32>
    %4 = vector.broadcast %3 : vector<1x96xf32> to vector<16x96xf32>
    %5 = arith.addf %2, %4 : vector<16x96xf32>
    %c0_5 = arith.constant 0 : index
    %c0_6 = arith.constant 0 : index
    %6 = vector.load %arg1[%c0_5, %c0_6] : memref<16x16xf32, #tpu.memory_space<vmem>>, vector<16x16xf32>
    %7 = vector.extract_strided_slice %5 {offsets = [0, 0], sizes = [16, 8], strides = [1, 1]} : vector<16x96xf32> to vector<16x8xf32>
    %8 = vector.extract_strided_slice %5 {offsets = [0, 32], sizes = [16, 8], strides = [1, 1]} : vector<16x96xf32> to vector<16x8xf32>
    %9 = vector.extract_strided_slice %5 {offsets = [0, 64], sizes = [16, 8], strides = [1, 1]} : vector<16x96xf32> to vector<16x8xf32>
    %cst_7 = arith.constant dense<0.000000e+00> : vector<16x16xf32>
    %10 = tpu.matmul %7, %8, %cst_7 {dimension_numbers = #tpu.dot_dimension_numbers<[1], [1], [0], [0], [0, 0, 1, 0], [], []>} : vector<16x8xf32>, vector<16x8xf32>, vector<16x16xf32> -> vector<16x16xf32>
    %11 = arith.addf %10, %6 : vector<16x16xf32>
    %cst_8 = arith.constant dense<0xFF800000> : vector<16xf32>
    %12 = vector.multi_reduction <maximumf>, %11, %cst_8 [1] : vector<16x16xf32> to vector<16xf32>
    %13 = vector.shape_cast %12 : vector<16xf32> to vector<16x1xf32>
    %14 = vector.broadcast %13 : vector<16x1xf32> to vector<16x16xf32>
    %15 = arith.subf %11, %14 : vector<16x16xf32>
    %16 = math.exp %15 : vector<16x16xf32>
    %cst_9 = arith.constant dense<0.000000e+00> : vector<16xf32>
    %17 = vector.multi_reduction <add>, %16, %cst_9 [1] : vector<16x16xf32> to vector<16xf32>
    %18 = vector.shape_cast %17 : vector<16xf32> to vector<16x1xf32>
    %19 = tpu.reciprocal %18 {approx = true} : vector<16x1xf32> -> vector<16x1xf32>
    %20 = vector.broadcast %19 : vector<16x1xf32> to vector<16x16xf32>
    %21 = arith.mulf %16, %20 : vector<16x16xf32>
    %cst_10 = arith.constant dense<0.000000e+00> : vector<16x8xf32>
    %22 = tpu.matmul %21, %9, %cst_10 {dimension_numbers = #tpu.dot_dimension_numbers<[1], [0], [0], [1], [0, 0, 1, 1], [], []>} : vector<16x16xf32>, vector<16x8xf32>, vector<16x8xf32> -> vector<16x8xf32>
    %23 = vector.extract_strided_slice %5 {offsets = [0, 8], sizes = [16, 8], strides = [1, 1]} : vector<16x96xf32> to vector<16x8xf32>
    %24 = vector.extract_strided_slice %5 {offsets = [0, 40], sizes = [16, 8], strides = [1, 1]} : vector<16x96xf32> to vector<16x8xf32>
    %25 = vector.extract_strided_slice %5 {offsets = [0, 72], sizes = [16, 8], strides = [1, 1]} : vector<16x96xf32> to vector<16x8xf32>
    %cst_11 = arith.constant dense<0.000000e+00> : vector<16x16xf32>
    %26 = tpu.matmul %23, %24, %cst_11 {dimension_numbers = #tpu.dot_dimension_numbers<[1], [1], [0], [0], [0, 0, 1, 0], [], []>} : vector<16x8xf32>, vector<16x8xf32>, vector<16x16xf32> -> vector<16x16xf32>
    %27 = arith.addf %26, %6 : vector<16x16xf32>
    %cst_12 = arith.constant dense<0xFF800000> : vector<16xf32>
    %28 = vector.multi_reduction <maximumf>, %27, %cst_12 [1] : vector<16x16xf32> to vector<16xf32>
    %29 = vector.shape_cast %28 : vector<16xf32> to vector<16x1xf32>
    %30 = vector.broadcast %29 : vector<16x1xf32> to vector<16x16xf32>
    %31 = arith.subf %27, %30 : vector<16x16xf32>
    %32 = math.exp %31 : vector<16x16xf32>
    %cst_13 = arith.constant dense<0.000000e+00> : vector<16xf32>
    %33 = vector.multi_reduction <add>, %32, %cst_13 [1] : vector<16x16xf32> to vector<16xf32>
    %34 = vector.shape_cast %33 : vector<16xf32> to vector<16x1xf32>
    %35 = tpu.reciprocal %34 {approx = true} : vector<16x1xf32> -> vector<16x1xf32>
    %36 = vector.broadcast %35 : vector<16x1xf32> to vector<16x16xf32>
    %37 = arith.mulf %32, %36 : vector<16x16xf32>
    %cst_14 = arith.constant dense<0.000000e+00> : vector<16x8xf32>
    %38 = tpu.matmul %37, %25, %cst_14 {dimension_numbers = #tpu.dot_dimension_numbers<[1], [0], [0], [1], [0, 0, 1, 1], [], []>} : vector<16x16xf32>, vector<16x8xf32>, vector<16x8xf32> -> vector<16x8xf32>
    %39 = vector.extract_strided_slice %5 {offsets = [0, 16], sizes = [16, 8], strides = [1, 1]} : vector<16x96xf32> to vector<16x8xf32>
    %40 = vector.extract_strided_slice %5 {offsets = [0, 48], sizes = [16, 8], strides = [1, 1]} : vector<16x96xf32> to vector<16x8xf32>
    %41 = vector.extract_strided_slice %5 {offsets = [0, 80], sizes = [16, 8], strides = [1, 1]} : vector<16x96xf32> to vector<16x8xf32>
    %cst_15 = arith.constant dense<0.000000e+00> : vector<16x16xf32>
    %42 = tpu.matmul %39, %40, %cst_15 {dimension_numbers = #tpu.dot_dimension_numbers<[1], [1], [0], [0], [0, 0, 1, 0], [], []>} : vector<16x8xf32>, vector<16x8xf32>, vector<16x16xf32> -> vector<16x16xf32>
    %43 = arith.addf %42, %6 : vector<16x16xf32>
    %cst_16 = arith.constant dense<0xFF800000> : vector<16xf32>
    %44 = vector.multi_reduction <maximumf>, %43, %cst_16 [1] : vector<16x16xf32> to vector<16xf32>
    %45 = vector.shape_cast %44 : vector<16xf32> to vector<16x1xf32>
    %46 = vector.broadcast %45 : vector<16x1xf32> to vector<16x16xf32>
    %47 = arith.subf %43, %46 : vector<16x16xf32>
    %48 = math.exp %47 : vector<16x16xf32>
    %cst_17 = arith.constant dense<0.000000e+00> : vector<16xf32>
    %49 = vector.multi_reduction <add>, %48, %cst_17 [1] : vector<16x16xf32> to vector<16xf32>
    %50 = vector.shape_cast %49 : vector<16xf32> to vector<16x1xf32>
    %51 = tpu.reciprocal %50 {approx = true} : vector<16x1xf32> -> vector<16x1xf32>
    %52 = vector.broadcast %51 : vector<16x1xf32> to vector<16x16xf32>
    %53 = arith.mulf %48, %52 : vector<16x16xf32>
    %cst_18 = arith.constant dense<0.000000e+00> : vector<16x8xf32>
    %54 = tpu.matmul %53, %41, %cst_18 {dimension_numbers = #tpu.dot_dimension_numbers<[1], [0], [0], [1], [0, 0, 1, 1], [], []>} : vector<16x16xf32>, vector<16x8xf32>, vector<16x8xf32> -> vector<16x8xf32>
    %55 = vector.extract_strided_slice %5 {offsets = [0, 24], sizes = [16, 8], strides = [1, 1]} : vector<16x96xf32> to vector<16x8xf32>
    %56 = vector.extract_strided_slice %5 {offsets = [0, 56], sizes = [16, 8], strides = [1, 1]} : vector<16x96xf32> to vector<16x8xf32>
    %57 = vector.extract_strided_slice %5 {offsets = [0, 88], sizes = [16, 8], strides = [1, 1]} : vector<16x96xf32> to vector<16x8xf32>
    %cst_19 = arith.constant dense<0.000000e+00> : vector<16x16xf32>
    %58 = tpu.matmul %55, %56, %cst_19 {dimension_numbers = #tpu.dot_dimension_numbers<[1], [1], [0], [0], [0, 0, 1, 0], [], []>} : vector<16x8xf32>, vector<16x8xf32>, vector<16x16xf32> -> vector<16x16xf32>
    %59 = arith.addf %58, %6 : vector<16x16xf32>
    %cst_20 = arith.constant dense<0xFF800000> : vector<16xf32>
    %60 = vector.multi_reduction <maximumf>, %59, %cst_20 [1] : vector<16x16xf32> to vector<16xf32>
    %61 = vector.shape_cast %60 : vector<16xf32> to vector<16x1xf32>
    %62 = vector.broadcast %61 : vector<16x1xf32> to vector<16x16xf32>
    %63 = arith.subf %59, %62 : vector<16x16xf32>
    %64 = math.exp %63 : vector<16x16xf32>
    %cst_21 = arith.constant dense<0.000000e+00> : vector<16xf32>
    %65 = vector.multi_reduction <add>, %64, %cst_21 [1] : vector<16x16xf32> to vector<16xf32>
    %66 = vector.shape_cast %65 : vector<16xf32> to vector<16x1xf32>
    %67 = tpu.reciprocal %66 {approx = true} : vector<16x1xf32> -> vector<16x1xf32>
    %68 = vector.broadcast %67 : vector<16x1xf32> to vector<16x16xf32>
    %69 = arith.mulf %64, %68 : vector<16x16xf32>
    %cst_22 = arith.constant dense<0.000000e+00> : vector<16x8xf32>
    %70 = tpu.matmul %69, %57, %cst_22 {dimension_numbers = #tpu.dot_dimension_numbers<[1], [0], [0], [1], [0, 0, 1, 1], [], []>} : vector<16x16xf32>, vector<16x8xf32>, vector<16x8xf32> -> vector<16x8xf32>
    %71 = tpu.concatenate %22, %38, %54, %70 in 1 : vector<16x8xf32>, vector<16x8xf32>, vector<16x8xf32>, vector<16x8xf32> -> vector<16x32xf32>
    %c0_23 = arith.constant 0 : index
    %c0_24 = arith.constant 0 : index
    %72 = vector.load %arg4[%c0_23, %c0_24] : memref<32x32xf32, #tpu.memory_space<vmem>>, vector<32x32xf32>
    %cst_25 = arith.constant dense<0.000000e+00> : vector<16x32xf32>
    %73 = tpu.matmul %71, %72, %cst_25 {dimension_numbers = #tpu.dot_dimension_numbers<[1], [0], [0], [1], [0, 0, 1, 1], [], []>} : vector<16x32xf32>, vector<32x32xf32>, vector<16x32xf32> -> vector<16x32xf32>
    %c0_26 = arith.constant 0 : index
    %c0_27 = arith.constant 0 : index
    %74 = vector.load %arg5[%c0_26, %c0_27] : memref<1x32xf32, #tpu.memory_space<vmem>>, vector<1x32xf32>
    %75 = vector.broadcast %74 : vector<1x32xf32> to vector<16x32xf32>
    %76 = arith.addf %73, %75 : vector<16x32xf32>
    %c0_28 = arith.constant 0 : index
    %c0_29 = arith.constant 0 : index
    %77 = vector.load %arg6[%c0_28, %c0_29] : memref<16x32xf32, #tpu.memory_space<vmem>>, vector<16x32xf32>
    tpu.vector_store %arg6[%c0_28, %c0_29], %76 {strides = array<i32>} : memref<16x32xf32, #tpu.memory_space<vmem>>, vector<16x32xf32>,
    return
  }
}

</mosaic_0001>

<bundles_post_ra>
// kernel: tpu_custom_call.1
= control target key start
LH: loop header
LB: loop body
LE: loop exit
PB: predicated region body
PF: predicated region fallthrough
CT: control target
= control target key end

     0   :  { %11 = vsyncpa [#allocation3], 0  ;;  %s1802_s0 = inlined_call_operand.hbm [shape: f32[16,32], index: 0, kind: input, shape index: {}]   ;;  %s1803_s1 = inlined_call_operand.hbm [shape: f32[16,16], index: 1, kind: input, shape index: {}]   ;;  %s1804_s2 = inlined_call_operand.hbm [shape: f32[32,96], index: 2, kind: input, shape index: {}]   ;;  %s1805_s3 = inlined_call_operand.vmem [shape: f32[1,96], index: 3, kind: input, shape index: {}]   ;;  %s1806_s4 = inlined_call_operand.hbm [shape: f32[32,32], index: 4, kind: input, shape index: {}]   ;;  %s1807_s5 = inlined_call_operand.vmem [shape: f32[1,32], index: 5, kind: input, shape index: {}]   ;;  %s1808_s6 = inlined_call_operand.hbm [shape: f32[16,32], index: 6, kind: output, shape index: {}]  }
   0x1   :  { %12 = vsyncpa [#allocation6], 0 }
   0x2   :  { %13 = vsyncpa [#allocation9], 0 }
   0x3   :  { %14 = vsyncpa [#allocation4], 0  ;;  %s1538_s21 = smov [#allocation5]   ;;  %s1539_s23 = smov [#allocation2]  }
   0x4   :  { %s32_s22 = sshll.u32 %s1538_s21, 4  ;;  %s20_s24 = sshll.u32 %s1539_s23, 4  ;;  %s33_s22 = int_to_ptr.vmem [resolvable:$true] %s32_s22  ;;  %s1593_s24 = int_to_ptr.vmem [resolvable:$true] %s20_s24 }
   0x5   :  { %s1420_s27 = scalar_lea.hbm %s1803_s1, 256 }
   0x6   :  { %p1421_p0 = scmp.ne.s32.totalorder %s1803_s1, %s1420_s27  ;;  %p1424_p1 = scmp.lt.u32.totalorder %s1420_s27, %s1803_s1 }
   0x8   :  { %p1426_p2 = pnand %p1424_p1, %p1421_p0 }
   0xa   :  { %1429 = shalt.err (!%p1426_p2)
}
   0xb   :  { %s1430_s8 = scalar_lea.vmem %s33_s22, 256  ;;  %p1435_p4 = scmp.lt.s32.totalorder %s33_s22, %s33_s22 }
   0xc   :  { %p1431_p3 = scmp.ne.s32.totalorder %s33_s22, %s1430_s8  ;;  %p1436_p5 = scmp.lt.s32.totalorder %s1430_s8, %s1430_s8 }
   0xe   :  { %p1437_p6 = por %p1436_p5, %p1435_p4 }
  0x10   :  { %p1438_p7 = pnand %p1437_p6, %p1431_p3 }
  0x12   :  { %1441 = shalt.err (!%p1438_p7)
}
  0x13   :  { %s1540_s9 = smov 128   ;;  %s1541_s10 = smov 8  }
  0x14   :  { %38 = dma.hbm_to_vmem [thread:$0]  %s1803_s1, 256, %s33_s22, [#allocation6], %s1540_s9, %s1540_s9, %s1541_s10  }
  0x15   :  { %s1442_s15 = scalar_lea.hbm %s1802_s0, 256 }
  0x16   :  { %p1443_p8 = scmp.ne.s32.totalorder %s1802_s0, %s1442_s15  ;;  %p1446_p9 = scmp.lt.u32.totalorder %s1442_s15, %s1802_s0 }
  0x18   :  { %p1448_p10 = pnand %p1446_p9, %p1443_p8 }
  0x1a   :  { %1451 = shalt.err (!%p1448_p10)
}
  0x1b   :  { %s1452_s20 = scalar_lea.vmem %s1593_s24, 256  ;;  %p1457_p12 = scmp.lt.s32.totalorder %s1593_s24, %s1593_s24 }
  0x1c   :  { %p1453_p11 = scmp.ne.s32.totalorder %s1593_s24, %s1452_s20  ;;  %p1458_p13 = scmp.lt.s32.totalorder %s1452_s20, %s1452_s20 }
  0x1e   :  { %p1459_p0 = por %p1458_p13, %p1457_p12 }
  0x20   :  { %p1460_p1 = pnand %p1459_p0, %p1453_p11 }
  0x22   :  { %1463 = shalt.err (!%p1460_p1)
}
  0x23   :  { %26 = dma.hbm_to_vmem [thread:$0]  %s1802_s0, 256, %s1593_s24, [#allocation3], %s1540_s9, %s1540_s9, %s1541_s10  }
  0x24   :  { %s1542_s22 = smov [#allocation7]   ;;  %s1543_s25 = smov [#allocation8]  }
  0x25   :  { %s44_s23 = sshll.u32 %s1542_s22, 4  ;;  %s58_s26 = sshll.u32 %s1543_s25, 4  ;;  %s45_s23 = int_to_ptr.vmem [resolvable:$true] %s44_s23  ;;  %s1630_s26 = int_to_ptr.vmem [resolvable:$true] %s58_s26 }
  0x26   :  { %s1464_s29 = scalar_lea.hbm %s1804_s2, 512 }
  0x27   :  { %p1465_p2 = scmp.ne.s32.totalorder %s1804_s2, %s1464_s29  ;;  %p1468_p3 = scmp.lt.u32.totalorder %s1464_s29, %s1804_s2 }
  0x29   :  { %p1470_p4 = pnand %p1468_p3, %p1465_p2 }
  0x2b   :  { %1473 = shalt.err (!%p1470_p4)
}
  0x2c   :  { %s1474_s0 = scalar_lea.vmem %s45_s23, 512  ;;  %p1479_p6 = scmp.lt.s32.totalorder %s45_s23, %s45_s23 }
  0x2d   :  { %p1475_p5 = scmp.ne.s32.totalorder %s45_s23, %s1474_s0  ;;  %p1480_p7 = scmp.lt.s32.totalorder %s1474_s0, %s1474_s0 }
  0x2f   :  { %p1481_p8 = por %p1480_p7, %p1479_p6 }
  0x31   :  { %p1482_p9 = pnand %p1481_p8, %p1475_p5 }
  0x33   :  { %1485 = shalt.err (!%p1482_p9)
}
  0x34   :  { %50 = dma.hbm_to_vmem [thread:$0]  %s1804_s2, 512, %s45_s23, [#allocation6], %s1540_s9, %s1540_s9, %s1541_s10  }
  0x35   :  { %s1486_s15 = scalar_lea.hbm %s1806_s4, 512 }
  0x36   :  { %p1487_p10 = scmp.ne.s32.totalorder %s1806_s4, %s1486_s15  ;;  %p1490_p11 = scmp.lt.u32.totalorder %s1486_s15, %s1806_s4 }
  0x38   :  { %p1492_p12 = pnand %p1490_p11, %p1487_p10 }
  0x3a   :  { %1495 = shalt.err (!%p1492_p12)
}
  0x3b   :  { %s1496_s20 = scalar_lea.vmem %s1630_s26, 512  ;;  %p1501_p0 = scmp.lt.s32.totalorder %s1630_s26, %s1630_s26 }
  0x3c   :  { %p1497_p13 = scmp.ne.s32.totalorder %s1630_s26, %s1496_s20  ;;  %p1502_p1 = scmp.lt.s32.totalorder %s1496_s20, %s1496_s20 }
  0x3e   :  { %p1503_p2 = por %p1502_p1, %p1501_p0 }
  0x40   :  { %p1504_p3 = pnand %p1503_p2, %p1497_p13 }
  0x42   :  { %1507 = shalt.err (!%p1504_p3)
}
  0x43   :  { %64 = dma.hbm_to_vmem [thread:$0]  %s1806_s4, 512, %s1630_s26, [#allocation9], %s1540_s9, %s1540_s9, %s1541_s10  }
  0x44   :  { %1530 = dma.done.wait [#allocation3], 256  }
  0x45   :  { %1531 = vsyncadd [#allocation3], 4294967040 }
  0x46   :  { %1532 = dma.done.wait [#allocation6], 768  }
  0x47   :  { %1533 = vsyncadd [#allocation6], 4294966528 }
  0x48   :  { %1534 = dma.done.wait [#allocation9], 512  }
  0x49   :  { %1535 = vsyncadd [#allocation9], 4294966784  ;;  %vm92_vm0 = vcmask 261120   ;;  %v81_v0 = vld [vmem:[#allocation7] sm:$0xff]  ;;  %v82_v1 = vld [vmem:[#allocation7 + $0x8] sm:$0xff]  ;;  %vm182_vm1 = vcmask 64512  }
  0x4a   :  { %v83_v2 = vld [vmem:[#allocation7 + $0x10] sm:$0xff]  ;;  %v1272_v3 = vpack.c.bf16 %v82_v1, %v81_v0  ;;  %v84_v4 = vld [vmem:[#allocation7 + $0x18] sm:$0xff]  ;;  %v79_v5 = vld [vmem:[#allocation2] sm:$0xff]  ;;  %s1544_s22 = smov 96   ;;  %vm266_vm3 = vcmask 130048   ;;  %s1546_s23 = smov 88  }
  0x4b   :  { %v1276_v6 = vpack.c.bf16 %v84_v4, %v83_v2  ;;  %1202 = vmatprep.mubr.msk.f32.mxu0 %vm92_vm0, %v79_v5  ;;  %v80_v7 = vld [vmem:[#allocation2 + $0x8] sm:$0xff]  ;;  %v1120_v8 = vld [vmem:[%s1805_s3] ss:$0 sm:$0xff]  ;;  %vm1685_vm2 = vmpackc.low %vm182_vm1, %vm182_vm1  ;;  %s1545_s3 = smov 64   ;;  %s1547_s25 = smov 120   ;;  %vm1004_vm4 = vcmask 195584  }
  0x4c   :  { %1273 = vmatprep.subr.bf16.mxu0 %v1272_v3  ;;  %v1695_v19 = vld [vmem:[#allocation5 + $0x8] sm:$0xff]  ;;  %v1697_v20 = vld [vmem:[#allocation5] sm:$0xff]  ;;  %s1548_s26 = smov 56   ;;  %s1549_s27 = smov 80  }
  0x4d   :  { %1275 = vmatpush3.bf16.msra.mxu0 %v1272_v3  ;;  %s1550_s28 = smov 112   ;;  %s1551_s29 = smov 72  }
  0x4e   :  { %1277 = vmatprep.subr.bf16.mxu0 %v1276_v6  ;;  %s1552_s30 = smov 104   ;;  %s1553_s7 = smov 48  }
  0x4f   :  { %s1554_s8 = smov 40   ;;  %s1555_s11 = smov 16  }
  0x50   :  { %s1556_s0 = smov 24   ;;  %s1557_s13 = smov [#allocation10]  }
  0x51   :  { %1279 = vmatpush3.bf16.msra.mxu0 %v1276_v6  ;;  %s1106_s14 = sshll.u32 %s1557_s13, 4  ;;  %s1107_s14 = int_to_ptr.vmem [resolvable:$true] %s1106_s14 }
  0x52   :  { %s1508_s15 = scalar_lea.vmem %s1107_s14, 256  ;;  %p1513_p5 = scmp.lt.s32.totalorder %s1107_s14, %s1107_s14 }
  0x53   :  { %p1509_p4 = scmp.ne.s32.totalorder %s1107_s14, %s1508_s15  ;;  %p1514_p6 = scmp.lt.s32.totalorder %s1508_s15, %s1508_s15 }
  0x54   :  { %1203 = vmatmul.mubr.msk.f32.vlgmr.msra.gmra.mrb[0].mxu0 %vm92_vm0, %v80_v7 }
  0x55   :  { %p1515_p7 = por %p1514_p6, %p1513_p5 }
  0x57   :  { %p1516_p8 = pnand %p1515_p7, %p1509_p4 }
 0x127   :  { %v1204_v9 = vpop.f32.mrb[0].mxu0 }
 0x128   :  { %v1672_v10 = vadd.f32 %v1204_v9, %v1120_v8  ;;  %v165_v11 = vpop.f32.mrb[1].mxu0 }
 0x129   :  { %v1674_v12 = vadd.f32 %v1120_v8, %v165_v11 }
 0x12b   :  { %1209 = vmatprep.mubr.msk.f32.mxu1 %vm182_vm1, %v1674_v12  ;;  %v1680_v13 = vpack.i.bf16 %v1672_v10, %v1674_v12 }
 0x12d   :  { %1349 = vrot.lane.b32.xlu0 %v1680_v13, %s1544_s22 }
 0x19f   :  { %v1350_v14 = vpop.permute.xlu0 %1349 }
 0x1a0   :  { %v1352_v15 = vunpack.i.h.bf16 %v1350_v14  ;;  %v1351_v16 = vunpack.i.l.bf16 %v1350_v14 }
 0x1a2   :  { %v1280_v18 = vpack.c.bf16 %v1352_v15, %v1351_v16 }
 0x1a4   :  { %1282 = vmatprep.subr.msk.bf16.mxu1 %vm1685_vm2, %v1280_v18 }
 0x1a5   :  { %1285 = vmatpush3.bf16.xpose.msk.msra.mxu1 %vm1685_vm2, %v1280_v18 }
 0x1ac   :  { %1210 = vmatmul.mubr.msk.f32.vlgmr.msra.gmra.mrb[0].mxu1 %vm182_vm1, %v1672_v10 }
 0x27f   :  { %v1211_v21 = vpop.f32.mrb[0].mxu1 }
 0x280   :  { %v263_v22 = vadd.f32 %v1211_v21, %v1695_v19  ;;  %v257_v23 = vpop.f32.mrb[1].mxu1 }
 0x281   :  { %v258_v24 = vadd.f32 %v257_v23, %v1697_v20 }
 0x282   :  { %v270_v25 = vsel %vm266_vm3, %v263_v22, -inf }
 0x283   :  { %271 = vmax.xlane.f32.xlu1 %v270_v25  ;;  %v267_v26 = vsel %vm266_vm3, %v258_v24, -inf }
 0x284   :  { %268 = vmax.xlane.f32.xlu0 %v267_v26 }
 0x294   :  { %1354 = vrot.lane.b32.xlu1 %v1680_v13, %s1545_s3 }
 0x298   :  { %1359 = vrot.lane.b32.xlu1 %v1680_v13, %s1546_s23 }
 0x29a   :  { %378 = vrot.lane.b32.xlu0 %v1672_v10, %s1547_s25 }
 0x310   :  { %v272_v27 = vpop.xlane.xlu1 %271 }
 0x311   :  { %v274_v28 = vsub.f32 %v263_v22, %v272_v27  ;;  %v269_v29 = vpop.xlane.xlu0 %268 }
 0x312   :  { %v273_v30 = vsub.f32 %v258_v24, %v269_v29 }
 0x313   :  { %v277_v31 = vmul.f32 1.442695, %v274_v28 }
 0x314   :  { %v275_v32 = vmul.f32 1.442695, %v273_v30  ;;  %v1355_v33 = vpop.permute.xlu1 %1354 }
 0x315   :  { %1388 = vpow2.f32 %v277_v31  ;;  %v1357_v34 = vunpack.i.h.bf16 %v1355_v33  ;;  %v1356_v35 = vunpack.i.l.bf16 %v1355_v33  ;;  %v379_v52 = vpop.permute.xlu0 %378 }
 0x316   :  { %1390 = vpow2.f32 %v275_v32 }
 0x317   :  { %v1286_v36 = vpack.c.bf16 %v1357_v34, %v1356_v35 }
 0x318   :  { %v1360_v37 = vpop.permute.xlu1 %1359 }
 0x319   :  { %v1362_v38 = vunpack.i.h.bf16 %v1360_v37  ;;  %v1361_v39 = vunpack.i.l.bf16 %v1360_v37  ;;  %1287 = vmatprep.subr.bf16.mxu1 %v1286_v36 }
 0x31a   :  { %1289 = vmatpush3.bf16.msra.mxu1 %v1286_v36 }
 0x31b   :  { %v1290_v40 = vpack.c.bf16 %v1362_v38, %v1361_v39 }
 0x31d   :  { %1292 = vmatprep.subr.msk.bf16.mxu1 %vm1685_vm2, %v1290_v40 }
 0x31f   :  { %v1389_v41 = vpop.eup %1388 }
 0x320   :  { %v282_v42 = vsel %vm266_vm3, %v1389_v41, 0.0  ;;  %v1391_v43 = vpop.eup %1390 }
 0x321   :  { %283 = vadd.xlane.f32.xlu1 %v282_v42  ;;  %v279_v44 = vsel %vm266_vm3, %v1391_v43, 0.0 }
 0x325   :  { %280 = vadd.xlane.f32.xlu1 %v279_v44 }
 0x336   :  { %376 = vrot.lane.b32.xlu1 %v1674_v12, %s1547_s25 }
 0x3ae   :  { %v284_v45 = vpop.xlane.xlu1 %283 }
 0x3af   :  { %1392 = vrcp.f32 %v284_v45 }
 0x3b2   :  { %v281_v46 = vpop.xlane.xlu1 %280 }
 0x3b3   :  { %1394 = vrcp.f32 %v281_v46 }
 0x3b6   :  { %v377_v51 = vpop.permute.xlu1 %376 }
 0x3b9   :  { %v1393_v47 = vpop.eup %1392 }
 0x3ba   :  { %v288_v50 = vmul.f32 %v1393_v47, %v1389_v41 }
 0x3bd   :  { %v1395_v48 = vpop.eup %1394 }
 0x3be   :  { %v287_v49 = vmul.f32 %v1395_v48, %v1391_v43 }
 0x3c0   :  { %1216 = vmatprep.mubr.msk.f32.mxu1 %vm266_vm3, %v287_v49 }
 0x3c1   :  { %1217 = vmatmul.mubr.msk.f32.vlgmr.msra.gmra.mrb[2].mxu1 %vm266_vm3, %v288_v50 }
 0x3c2   :  { %1295 = vmatpush3.bf16.xpose.msk.msra.mxu1 %vm1685_vm2, %v1290_v40  ;;  %1223 = vmatprep.mubr.msk.f32.mxu1 %vm182_vm1, %v377_v51 }
 0x3c9   :  { %1224 = vmatmul.mubr.msk.f32.vlgmr.msra.gmra.mrb[4].mxu1 %vm182_vm1, %v379_v52 }
 0x494   :  { %v1717_v53 = vpop.f32.mrb[2].mxu1 }
 0x495   :  { %v1719_v54 = vpop.f32.mrb[3].mxu1 }
 0x49c   :  { %v1225_v55 = vpop.f32.mrb[4].mxu1 }
 0x49d   :  { %v464_v56 = vadd.f32 %v1225_v55, %v1695_v19  ;;  %v458_v57 = vpop.f32.mrb[5].mxu1 }
 0x49e   :  { %v459_v58 = vadd.f32 %v458_v57, %v1697_v20 }
 0x49f   :  { %v470_v59 = vsel %vm266_vm3, %v464_v56, -inf }
 0x4a0   :  { %471 = vmax.xlane.f32.xlu0 %v470_v59  ;;  %v467_v60 = vsel %vm266_vm3, %v459_v58, -inf }
 0x4a1   :  { %468 = vmax.xlane.f32.xlu1 %v467_v60 }
 0x4b2   :  { %1364 = vrot.lane.b32.xlu1 %v1680_v13, %s1548_s26 }
 0x4b6   :  { %1369 = vrot.lane.b32.xlu0 %v1680_v13, %s1549_s27  ;;  %576 = vrot.lane.b32.xlu1 %v1674_v12, %s1550_s28 }
 0x52d   :  { %v472_v61 = vpop.xlane.xlu0 %471 }
 0x52e   :  { %v474_v62 = vsub.f32 %v464_v56, %v472_v61  ;;  %v469_v63 = vpop.xlane.xlu1 %468 }
 0x52f   :  { %v473_v0 = vsub.f32 %v459_v58, %v469_v63 }
 0x530   :  { %v477_v1 = vmul.f32 1.442695, %v474_v62 }
 0x531   :  { %v475_v2 = vmul.f32 1.442695, %v473_v0  ;;  %v1370_v3 = vpop.permute.xlu0 %1369 }
 0x532   :  { %1396 = vpow2.f32 %v477_v1  ;;  %v1365_v4 = vpop.permute.xlu1 %1364  ;;  %v1372_v5 = vunpack.i.h.bf16 %v1370_v3  ;;  %v1371_v6 = vunpack.i.l.bf16 %v1370_v3 }
 0x533   :  { %v1367_v7 = vunpack.i.h.bf16 %v1365_v4  ;;  %v1366_v8 = vunpack.i.l.bf16 %v1365_v4  ;;  %1398 = vpow2.f32 %v475_v2 }
 0x534   :  { %v1300_v11 = vpack.c.bf16 %v1372_v5, %v1371_v6 }
 0x535   :  { %v1296_v9 = vpack.c.bf16 %v1367_v7, %v1366_v8 }
 0x536   :  { %v577_v21 = vpop.permute.xlu1 %576 }
 0x537   :  { %1297 = vmatprep.subr.bf16.mxu0 %v1296_v9 }
 0x538   :  { %1299 = vmatpush3.bf16.msra.mxu0 %v1296_v9 }
 0x539   :  { %1302 = vmatprep.subr.msk.bf16.mxu0 %vm1685_vm2, %v1300_v11 }
 0x53c   :  { %v1397_v14 = vpop.eup %1396 }
 0x53d   :  { %v482_v15 = vsel %vm266_vm3, %v1397_v14, 0.0  ;;  %v1399_v16 = vpop.eup %1398 }
 0x53e   :  { %483 = vadd.xlane.f32.xlu1 %v482_v15  ;;  %v479_v18 = vsel %vm266_vm3, %v1399_v16, 0.0 }
 0x542   :  { %480 = vadd.xlane.f32.xlu1 %v479_v18 }
 0x553   :  { %578 = vrot.lane.b32.xlu1 %v1672_v10, %s1550_s28 }
 0x5cb   :  { %v484_v22 = vpop.xlane.xlu1 %483 }
 0x5cc   :  { %1400 = vrcp.f32 %v484_v22 }
 0x5cf   :  { %v481_v23 = vpop.xlane.xlu1 %480 }
 0x5d0   :  { %1402 = vrcp.f32 %v481_v23 }
 0x5d3   :  { %v579_v28 = vpop.permute.xlu1 %578 }
 0x5d6   :  { %v1401_v24 = vpop.eup %1400 }
 0x5d7   :  { %v488_v27 = vmul.f32 %v1401_v24, %v1397_v14 }
 0x5da   :  { %v1403_v25 = vpop.eup %1402 }
 0x5db   :  { %v487_v26 = vmul.f32 %v1403_v25, %v1399_v16 }
 0x5dd   :  { %1230 = vmatprep.mubr.msk.f32.mxu0 %vm266_vm3, %v487_v26 }
 0x5de   :  { %1231 = vmatmul.mubr.msk.f32.vlgmr.msra.gmra.mrb[2].mxu0 %vm266_vm3, %v488_v27 }
 0x5df   :  { %1305 = vmatpush3.bf16.xpose.msk.msra.mxu0 %vm1685_vm2, %v1300_v11  ;;  %1237 = vmatprep.mubr.msk.f32.mxu0 %vm182_vm1, %v577_v21 }
 0x5e6   :  { %1238 = vmatmul.mubr.msk.f32.vlgmr.msra.gmra.mrb[4].mxu0 %vm182_vm1, %v579_v28 }
 0x6b1   :  { %v1739_v29 = vpop.f32.mrb[2].mxu0 }
 0x6b2   :  { %v1741_v30 = vpop.f32.mrb[3].mxu0 }
 0x6b9   :  { %v1239_v31 = vpop.f32.mrb[4].mxu0 }
 0x6ba   :  { %v664_v32 = vadd.f32 %v1239_v31, %v1695_v19  ;;  %v658_v33 = vpop.f32.mrb[5].mxu0  ;;  %v1009_v31 = vld [vmem:[#allocation8 + $0x10] sm:$0xff] }
 0x6bb   :  { %v659_v34 = vadd.f32 %v658_v33, %v1697_v20  ;;  %v1010_v33 = vld [vmem:[#allocation8 + $0x18] sm:$0xff] }
 0x6bc   :  { %v670_v35 = vsel %vm266_vm3, %v664_v32, -inf }
 0x6bd   :  { %671 = vmax.xlane.f32.xlu0 %v670_v35  ;;  %v667_v36 = vsel %vm266_vm3, %v659_v34, -inf }
 0x6be   :  { %668 = vmax.xlane.f32.xlu1 %v667_v36 }
 0x74a   :  { %v672_v37 = vpop.xlane.xlu0 %671 }
 0x74b   :  { %v674_v38 = vsub.f32 %v664_v32, %v672_v37  ;;  %v669_v39 = vpop.xlane.xlu1 %668 }
 0x74c   :  { %v673_v40 = vsub.f32 %v659_v34, %v669_v39  ;;  %v1324_v34 = vpack.c.bf16 %v1010_v33, %v1009_v31 }
 0x74d   :  { %v677_v41 = vmul.f32 1.442695, %v674_v38 }
 0x74e   :  { %v675_v42 = vmul.f32 1.442695, %v673_v40 }
 0x74f   :  { %1404 = vpow2.f32 %v677_v41 }
 0x750   :  { %1406 = vpow2.f32 %v675_v42 }
 0x759   :  { %v1405_v43 = vpop.eup %1404 }
 0x75a   :  { %v1407_v44 = vpop.eup %1406  ;;  %v682_v45 = vsel %vm266_vm3, %v1405_v43, 0.0 }
 0x75b   :  { %683 = vadd.xlane.f32.xlu1 %v682_v45  ;;  %v679_v46 = vsel %vm266_vm3, %v1407_v44, 0.0 }
 0x75c   :  { %680 = vadd.xlane.f32.xlu0 %v679_v46 }
 0x76c   :  { %1379 = vrot.lane.b32.xlu1 %v1680_v13, %s1551_s29 }
 0x770   :  { %776 = vrot.lane.b32.xlu1 %v1674_v12, %s1552_s30 }
 0x772   :  { %1374 = vrot.lane.b32.xlu0 %v1680_v13, %s1553_s7 }
 0x776   :  { %778 = vrot.lane.b32.xlu0 %v1672_v10, %s1552_s30 }
 0x7e8   :  { %v684_v47 = vpop.xlane.xlu1 %683 }
 0x7e9   :  { %1408 = vrcp.f32 %v684_v47  ;;  %v681_v48 = vpop.xlane.xlu0 %680 }
 0x7ea   :  { %1410 = vrcp.f32 %v681_v48 }
 0x7ec   :  { %v1380_v49 = vpop.permute.xlu1 %1379 }
 0x7ed   :  { %v1375_v50 = vpop.permute.xlu0 %1374  ;;  %v1382_v51 = vunpack.i.h.bf16 %v1380_v49  ;;  %v1381_v52 = vunpack.i.l.bf16 %v1380_v49  ;;  %v1147_v49 = vld [vmem:[%s1807_s5] ss:$0 sm:$0xff] }
 0x7ee   :  { %v1377_v55 = vunpack.i.h.bf16 %v1375_v50  ;;  %v1376_v56 = vunpack.i.l.bf16 %v1375_v50 }
 0x7ef   :  { %v1310_v58 = vpack.c.bf16 %v1382_v51, %v1381_v52 }
 0x7f0   :  { %v1306_v57 = vpack.c.bf16 %v1377_v55, %v1376_v56  ;;  %v777_v61 = vpop.permute.xlu1 %776 }
 0x7f1   :  { %v779_v62 = vpop.permute.xlu0 %778 }
 0x7f2   :  { %1307 = vmatprep.subr.bf16.mxu1 %v1306_v57 }
 0x7f3   :  { %v1409_v59 = vpop.eup %1408  ;;  %1309 = vmatpush3.bf16.msra.mxu1 %v1306_v57 }
 0x7f4   :  { %v1411_v12 = vpop.eup %1410  ;;  %1312 = vmatprep.subr.msk.bf16.mxu1 %vm1685_vm2, %v1310_v58  ;;  %v688_v60 = vmul.f32 %v1409_v59, %v1405_v43 }
 0x7f5   :  { %v687_v10 = vmul.f32 %v1411_v12, %v1407_v44 }
 0x7f7   :  { %1244 = vmatprep.mubr.msk.f32.mxu1 %vm266_vm3, %v687_v10 }
 0x7f8   :  { %1245 = vmatmul.mubr.msk.f32.vlgmr.msra.gmra.mrb[6].mxu1 %vm266_vm3, %v688_v60 }
 0x7f9   :  { %1251 = vmatprep.mubr.msk.f32.mxu1 %vm182_vm1, %v777_v61 }
 0x7fc   :  { %1315 = vmatpush3.bf16.xpose.msk.msra.mxu1 %vm1685_vm2, %v1310_v58 }
 0x803   :  { %1252 = vmatmul.mubr.msk.f32.vlgmr.msra.gmra.mrb[8].mxu1 %vm182_vm1, %v779_v62 }
 0x8cb   :  { %v1246_v63 = vpop.f32.mrb[6].mxu1 }
 0x8cc   :  { %v767_v0 = vpop.f32.mrb[7].mxu1 }
 0x8d6   :  { %v1253_v1 = vpop.f32.mrb[8].mxu1 }
 0x8d7   :  { %v864_v2 = vadd.f32 %v1253_v1, %v1695_v19  ;;  %v858_v3 = vpop.f32.mrb[9].mxu1 }
 0x8d8   :  { %v859_v4 = vadd.f32 %v858_v3, %v1697_v20 }
 0x8d9   :  { %v870_v5 = vsel %vm266_vm3, %v864_v2, -inf }
 0x8da   :  { %871 = vmax.xlane.f32.xlu0 %v870_v5  ;;  %v867_v6 = vsel %vm266_vm3, %v859_v4, -inf }
 0x8db   :  { %868 = vmax.xlane.f32.xlu1 %v867_v6 }
 0x967   :  { %v872_v7 = vpop.xlane.xlu0 %871 }
 0x968   :  { %v874_v17 = vsub.f32 %v864_v2, %v872_v7  ;;  %v869_v8 = vpop.xlane.xlu1 %868 }
 0x969   :  { %v873_v9 = vsub.f32 %v859_v4, %v869_v8 }
 0x96a   :  { %v877_v11 = vmul.f32 1.442695, %v874_v17 }
 0x96b   :  { %v875_v14 = vmul.f32 1.442695, %v873_v9 }
 0x96c   :  { %1412 = vpow2.f32 %v877_v11 }
 0x96d   :  { %1414 = vpow2.f32 %v875_v14 }
 0x976   :  { %v1413_v15 = vpop.eup %1412 }
 0x977   :  { %v1415_v16 = vpop.eup %1414  ;;  %v882_v19 = vsel %vm266_vm3, %v1413_v15, 0.0 }
 0x978   :  { %883 = vadd.xlane.f32.xlu1 %v882_v19  ;;  %v879_v20 = vsel %vm266_vm3, %v1415_v16, 0.0 }
 0x979   :  { %880 = vadd.xlane.f32.xlu0 %v879_v20 }
 0x989   :  { %978 = vrot.lane.b32.xlu1 %v1741_v30, %s1541_s10  ;;  %v1008_v30 = vld [vmem:[#allocation8 + $0x8] sm:$0xff] }
 0x98d   :  { %980 = vrot.lane.b32.xlu1 %v1739_v29, %s1541_s10 }
 0x98f   :  { %1384 = vrot.lane.b32.xlu0 %v1680_v13, %s1554_s8  ;;  %v1007_v13 = vld [vmem:[#allocation8] sm:$0xff] }
 0x990   :  { %v1320_v32 = vpack.c.bf16 %v1008_v30, %v1007_v13 }
 0x991   :  { %988 = vrot.lane.b32.xlu1 %v1246_v63, %s1555_s11 }
 0x993   :  { %986 = vrot.lane.b32.xlu0 %v767_v0, %s1555_s11 }
 0xa05   :  { %v884_v18 = vpop.xlane.xlu1 %883 }
 0xa06   :  { %1416 = vrcp.f32 %v884_v18  ;;  %v881_v21 = vpop.xlane.xlu0 %880 }
 0xa07   :  { %1418 = vrcp.f32 %v881_v21 }
 0xa09   :  { %v979_v37 = vpop.permute.xlu1 %978 }
 0xa0a   :  { %v1385_v22 = vpop.permute.xlu0 %1384  ;;  %v1000_v41 = vsel %vm182_vm1, %v1719_v54, %v979_v37 }
 0xa0b   :  { %v1387_v23 = vunpack.i.h.bf16 %v1385_v22  ;;  %v1386_v24 = vunpack.i.l.bf16 %v1385_v22 }
 0xa0d   :  { %v1316_v25 = vpack.c.bf16 %v1387_v23, %v1386_v24  ;;  %v981_v38 = vpop.permute.xlu1 %980 }
 0xa0e   :  { %v987_v40 = vpop.permute.xlu0 %986  ;;  %v1001_v43 = vsel %vm182_vm1, %v1717_v53, %v981_v38 }
 0xa0f   :  { %1317 = vmatprep.subr.bf16.mxu0 %v1316_v25  ;;  %v1002_v44 = vsel %vm266_vm3, %v1000_v41, %v987_v40 }
 0xa10   :  { %v1417_v26 = vpop.eup %1416  ;;  %1319 = vmatpush3.bf16.msra.mxu0 %v1316_v25 }
 0xa11   :  { %v1419_v27 = vpop.eup %1418  ;;  %v888_v29 = vmul.f32 %v1417_v26, %v1413_v15  ;;  %1321 = vmatprep.subr.bf16.mxu0 %v1320_v32  ;;  %v989_v39 = vpop.permute.xlu1 %988 }
 0xa12   :  { %v887_v28 = vmul.f32 %v1419_v27, %v1415_v16  ;;  %v1003_v46 = vsel %vm266_vm3, %v1001_v43, %v989_v39 }
 0xa14   :  { %1258 = vmatprep.mubr.msk.f32.mxu0 %vm266_vm3, %v887_v28 }
 0xa15   :  { %1259 = vmatmul.mubr.msk.f32.vlgmr.msra.gmra.mrb[6].mxu0 %vm266_vm3, %v888_v29 }
 0xa16   :  { %1323 = vmatpush3.bf16.msra.mxu0 %v1320_v32 }
 0xa17   :  { %1325 = vmatprep.subr.bf16.mxu0 %v1324_v34 }
 0xa1a   :  { %1327 = vmatpush3.bf16.msra.mxu0 %v1324_v34 }
 0xae8   :  { %v1260_v35 = vpop.f32.mrb[6].mxu0 }
 0xae9   :  { %996 = vrot.lane.b32.xlu1 %v1260_v35, %s1556_s0  ;;  %v967_v36 = vpop.f32.mrb[7].mxu0 }
 0xaea   :  { %994 = vrot.lane.b32.xlu0 %v967_v36, %s1556_s0 }
 0xb5b   :  { %v997_v42 = vpop.permute.xlu1 %996 }
 0xb5c   :  { %v995_v45 = vpop.permute.xlu0 %994  ;;  %v1006_v48 = vsel %vm1004_vm4, %v1003_v46, %v997_v42 }
 0xb5d   :  { %v1005_v47 = vsel %vm1004_vm4, %v1002_v44, %v995_v45 }
 0xb5e   :  { %1269 = vmatprep.mubr.msk.f32.mxu0 %vm92_vm0, %v1005_v47 }
 0xb5f   :  { %1270 = vmatmul.mubr.msk.f32.vlgmr.msra.gmra.mrb[8].mxu0 %vm92_vm0, %v1006_v48 }
 0xc32   :  { %v1271_v54 = vpop.f32.mrb[8].mxu0 }
 0xc33   :  { %v1096_v50 = vadd.f32 %v1271_v54, %v1147_v49  ;;  %v1090_v53 = vpop.f32.mrb[9].mxu0 }
 0xc34   :  { %v1091_v51 = vadd.f32 %v1147_v49, %v1090_v53 }
 0xc35   :  { %1100 = vst.msk [vmem:[#allocation10 + $0x8] sm:$0xff] %vm92_vm0, %v1096_v50 }
 0xc36   :  { %1099 = vst.msk [vmem:[#allocation10] sm:$0xff] %vm92_vm0, %v1091_v51 }
 0xc37   :  { %1519 = shalt.err (!%p1516_p8)
}
 0xc38   :  { %s1520_s17 = scalar_lea.hbm %s1808_s6, 256 }
 0xc39   :  { %p1521_p9 = scmp.ne.s32.totalorder %s1808_s6, %s1520_s17  ;;  %p1524_p10 = scmp.lt.u32.totalorder %s1520_s17, %s1808_s6 }
 0xc3b   :  { %p1526_p11 = pnand %p1524_p10, %p1521_p9 }
 0xc3d   :  { %1529 = shalt.err (!%p1526_p11)
}
 0xc3e   :  { %1112 = dma.vmem_to_hbm [thread:$0]  %s1107_s14, 256, %s1808_s6, [#allocation4], %s1540_s9, %s1540_s9, %s1541_s10  }
 0xc3f   :  { %1536 = dma.done.wait [#allocation4], 256  }
 0xc40   :  { %1537 = vsyncadd [#allocation4], 4294967040 }
 0xc41   :  { %1116 = vsyncpa [#allocation3], 1 }
 0xc42   :  { %1117 = vsyncpa [#allocation6], 1 }
 0xc43   :  { %1118 = vsyncpa [#allocation9], 1 }
 0xc44   :  { %1119 = vsyncpa [#allocation4], 1 }

</bundles_post_ra>
